<compile_context>
chip_gen: v6e
topology: v6e:2x2x1
jax: 0.10.0
libtpu: 0.0.40
codegen_flags: <defaults>
</compile_context>

<pallas_src>
import functools

import jax
import jax.numpy as jnp
from jax.experimental import pallas as pl
from jax.experimental.pallas import tpu as pltpu


def _round_up(n: int, m: int) -> int:
    return ((n + m - 1) // m) * m


# tk/tn depend only on the weight shape, so W can be padded/transposed once at
# parameter-prep time; tm depends on the (runtime, but statically shaped) batch.
def _kn_tiles(in_f: int, out_f: int):
    tk = min(1024, _round_up(in_f, 128))
    tn = min(512, _round_up(out_f, 128))
    return tk, tn


def _m_tile(batch: int) -> int:
    return min(512, _round_up(batch, 8))


def _linear_kernel(x_ref, w_ref, b_ref, o_ref):
    # x_ref: [tm, tk] f32 activation tile
    # w_ref: [tk, tn] bf16 weight tile, already in [In, Out] layout
    # b_ref: [1,  tn] f32 bias tile
    # o_ref: [tm, tn] f32 output tile — resident across the K axis, so it
    #                 doubles as the accumulator (no scratch needed).
    k = pl.program_id(2)

    @pl.when(k == 0)
    def _():
        # Initialize the resident output tile with the broadcast bias —
        # exactly once per (i, j) output tile.
        o_ref[...] = jnp.broadcast_to(b_ref[...], o_ref.shape)

    # Native [M,K] x [K,N] contraction on the MXU: bf16 inputs, f32 accumulate.
    o_ref[...] += jnp.dot(
        x_ref[...].astype(jnp.bfloat16),
        w_ref[...],
        preferred_element_type=jnp.float32,
    )


def prepare_expert_params(w, b):
    """One-time parameter prep (call OUTSIDE the per-step forward).

    - transposes W from torch's [Out, In] layout to [In, Out] so the kernel
      runs a native [M,K]x[K,N] dot (no in-kernel transpose),
    - zero-pads K/N to tile multiples once (not on every forward),
    - stores W in bf16 (halves the dominant HBM stream; accumulation stays f32).
    """
    out_f, in_f = w.shape
    assert b.shape == (out_f,)
    tk, tn = _kn_tiles(in_f, out_f)
    k_pad = _round_up(in_f, tk)
    n_pad = _round_up(out_f, tn)

    w_t = jnp.pad(w, ((0, n_pad - out_f), (0, k_pad - in_f))).T  # [k_pad, n_pad]
    w_t = w_t.astype(jnp.bfloat16)
    b2 = jnp.pad(b, (0, n_pad - out_f)).reshape(1, n_pad).astype(jnp.float32)
    return w_t, b2, in_f, out_f


@functools.partial(jax.jit, static_argnames=("in_f", "out_f"))
def expert_layer_forward(x, w_t, b2, *, in_f, out_f):
    """y = x @ W^T + b, with W pre-transposed/padded by prepare_expert_params."""
    batch = x.shape[0]
    assert x.shape[1] == in_f
    k_pad, n_pad = w_t.shape

    tk, tn = _kn_tiles(in_f, out_f)
    tm = _m_tile(batch)
    m_pad = _round_up(batch, tm)

    # Only x (small activation) is padded per call; the pad compiles away for
    # aligned shapes. W/b were padded once at prep time.
    if m_pad != batch or k_pad != in_f:
        x = jnp.pad(x, ((0, m_pad - batch), (0, k_pad - in_f)))

    grid = (m_pad // tm, n_pad // tn, k_pad // tk)

    # Deeper buffering on the W stream only when there are enough K steps to
    # benefit (the small-batch expert regime is W-bandwidth-bound).
    if grid[2] >= 3:
        w_spec = pl.BlockSpec((tk, tn), lambda i, j, k: (k, j),
                              pipeline_mode=pl.Buffered(3))
    else:
        w_spec = pl.BlockSpec((tk, tn), lambda i, j, k: (k, j))

    cost = pl.CostEstimate(
        flops=2 * m_pad * n_pad * k_pad,
        bytes_accessed=(m_pad * k_pad * 4      # x (f32)
                        + k_pad * n_pad * 2    # W (bf16)
                        + n_pad * 4            # bias
                        + m_pad * n_pad * 4),  # out (f32)
        transcendentals=0,
    )

    out = pl.pallas_call(
        _linear_kernel,
        out_shape=jax.ShapeDtypeStruct((m_pad, n_pad), jnp.float32),
        grid_spec=pltpu.PrefetchScalarGridSpec(
            num_scalar_prefetch=0,
            grid=grid,
            in_specs=[
                pl.BlockSpec((tm, tk), lambda i, j, k: (i, k)),   # x
                w_spec,                                           # W [In, Out] bf16
                pl.BlockSpec((1, tn), lambda i, j, k: (0, j)),    # bias
            ],
            out_specs=pl.BlockSpec((tm, tn), lambda i, j, k: (i, j)),
        ),
        compiler_params=pltpu.CompilerParams(
            dimension_semantics=("parallel", "parallel", "arbitrary"),
            vmem_limit_bytes=32 * 1024 * 1024,
        ),
        cost_estimate=cost,
    )(x, w_t, b2)

    if m_pad != batch or n_pad != out_f:
        out = out[:batch, :out_f]
    return out


if __name__ == "__main__":
    # Small shapes consistent with the module: batch=8, input=32, output=64.
    batch, input_size, output_size = 8, 32, 64

    key = jax.random.PRNGKey(0)
    kx, kw, kb = jax.random.split(key, 3)

    # Deterministic init mimicking nn.Linear default: U(-1/sqrt(in), 1/sqrt(in)).
    bound = 1.0 / jnp.sqrt(jnp.float32(input_size))
    w = jax.random.uniform(kw, (output_size, input_size), jnp.float32,
                           minval=-bound, maxval=bound)
    b = jax.random.uniform(kb, (output_size,), jnp.float32,
                           minval=-bound, maxval=bound)
    x = jax.random.normal(kx, (batch, input_size), jnp.float32)

    # One-time param prep (transpose + pad + bf16 cast of W), then forward.
    w_t, b2, in_f, out_f = prepare_expert_params(w, b)
    y = expert_layer_forward(x, w_t, b2, in_f=in_f, out_f=out_f)
    jax.block_until_ready(y)

    # Correctness vs the plain-JAX f32 reference (same math as torch Linear).
    # bf16 MXU inputs with f32 accumulation -> looser tolerance than pure f32.
    y_ref = x @ w.T + b
    assert y.shape == (batch, output_size)
    assert jnp.allclose(y, y_ref, atol=5e-2, rtol=5e-2), "mismatch vs reference"

    print("KERNEL_OK")
</pallas_src>

<mosaic_0001>
module attributes {stable_mosaic.version = 11 : i64} {
  func.func @_linear_kernel(%arg0: i32, %arg1: i32, %arg2: i32, %arg3: memref<8x128xf32, #tpu.memory_space<vmem>>, %arg4: memref<128x128xbf16, #tpu.memory_space<vmem>>, %arg5: memref<1x128xf32, #tpu.memory_space<vmem>>, %arg6: memref<8x128xf32, #tpu.memory_space<vmem>>) attributes {dimension_semantics = [#tpu.dimension_semantics<parallel>, #tpu.dimension_semantics<parallel>, #tpu.dimension_semantics<arbitrary>], iteration_bounds = array<i64: 1, 1, 1>, scalar_prefetch = 0 : i64, scratch_operands = 0 : i64, tpu.core_type = #tpu.core_type<tc>, window_params = [{transform_indices = @transform_0, window_bounds = array<i64: 8, 128>}, {transform_indices = @transform_1, window_bounds = array<i64: 128, 128>}, {transform_indices = @transform_2, window_bounds = array<i64: 1, 128>}, {transform_indices = @transform_3, window_bounds = array<i64: 8, 128>}]} {
    %c0_i32 = arith.constant 0 : i32
    %0 = arith.cmpi eq, %arg2, %c0_i32 : i32
    %1 = arith.extui %0 : i1 to i32
    %c0_i32_0 = arith.constant 0 : i32
    %2 = arith.cmpi ne, %1, %c0_i32_0 : i32
    scf.if %2 {
      %c0_8 = arith.constant 0 : index
      %c0_9 = arith.constant 0 : index
      %10 = vector.load %arg5[%c0_8, %c0_9] : memref<1x128xf32, #tpu.memory_space<vmem>>, vector<1x128xf32>
      %11 = vector.shape_cast %10 : vector<1x128xf32> to vector<1x128xf32>
      %12 = vector.broadcast %11 : vector<1x128xf32> to vector<8x128xf32>
      %c0_10 = arith.constant 0 : index
      %c0_11 = arith.constant 0 : index
      %13 = vector.load %arg6[%c0_10, %c0_11] : memref<8x128xf32, #tpu.memory_space<vmem>>, vector<8x128xf32>
      tpu.vector_store %arg6[%c0_10, %c0_11], %12 {strides = array<i32>} : memref<8x128xf32, #tpu.memory_space<vmem>>, vector<8x128xf32>,
    } else {
    }
    %c0 = arith.constant 0 : index
    %c0_1 = arith.constant 0 : index
    %3 = vector.load %arg6[%c0, %c0_1] : memref<8x128xf32, #tpu.memory_space<vmem>>, vector<8x128xf32>
    %c0_2 = arith.constant 0 : index
    %c0_3 = arith.constant 0 : index
    %4 = vector.load %arg3[%c0_2, %c0_3] : memref<8x128xf32, #tpu.memory_space<vmem>>, vector<8x128xf32>
    %5 = arith.truncf %4 : vector<8x128xf32> to vector<8x128xbf16>
    %c0_4 = arith.constant 0 : index
    %c0_5 = arith.constant 0 : index
    %6 = vector.load %arg4[%c0_4, %c0_5] : memref<128x128xbf16, #tpu.memory_space<vmem>>, vector<128x128xbf16>
    %cst = arith.constant dense<0.000000e+00> : vector<8x128xf32>
    %7 = tpu.matmul %5, %6, %cst {dimension_numbers = #tpu.dot_dimension_numbers<[1], [0], [0], [1], [0, 0, 1, 1], [], []>} : vector<8x128xbf16>, vector<128x128xbf16>, vector<8x128xf32> -> vector<8x128xf32>
    %8 = arith.addf %3, %7 : vector<8x128xf32>
    %c0_6 = arith.constant 0 : index
    %c0_7 = arith.constant 0 : index
    %9 = vector.load %arg6[%c0_6, %c0_7] : memref<8x128xf32, #tpu.memory_space<vmem>>, vector<8x128xf32>
    tpu.vector_store %arg6[%c0_6, %c0_7], %8 {strides = array<i32>} : memref<8x128xf32, #tpu.memory_space<vmem>>, vector<8x128xf32>,
    return
  }
  func.func @transform_0(%arg0: i32, %arg1: i32, %arg2: i32) -> (i32, i32) {
    %c0_i32 = arith.constant 0 : i32
    return %arg0, %arg2 : i32, i32
  }
  func.func @transform_1(%arg0: i32, %arg1: i32, %arg2: i32) -> (i32, i32) {
    %c0_i32 = arith.constant 0 : i32
    return %arg2, %arg1 : i32, i32
  }
  func.func @transform_2(%arg0: i32, %arg1: i32, %arg2: i32) -> (i32, i32) {
    %c0_i32 = arith.constant 0 : i32
    %c0_i32_0 = arith.constant 0 : i32
    return %c0_i32, %arg1 : i32, i32
  }
  func.func @transform_3(%arg0: i32, %arg1: i32, %arg2: i32) -> (i32, i32) {
    %c0_i32 = arith.constant 0 : i32
    return %arg0, %arg1 : i32, i32
  }
}

</mosaic_0001>

<bundles_post_ra>
// kernel: expert_layer_forward.1
= control target key start
LH: loop header
LB: loop body
LE: loop exit
PB: predicated region body
PF: predicated region fallthrough
CT: control target
= control target key end

     0   :  { %8 = vsyncpa [#allocation3], 0  ;;  %s300_s0 = inlined_call_operand.vmem [shape: f32[8,128], index: 0, kind: input, shape index: {}]   ;;  %s301_s1 = inlined_call_operand.hbm [shape: bf16[128,128], index: 1, kind: input, shape index: {}]   ;;  %s302_s2 = inlined_call_operand.vmem [shape: f32[1,128], index: 2, kind: input, shape index: {}]   ;;  %s303_s3 = inlined_call_operand.hbm [shape: f32[8,128], index: 3, kind: output, shape index: {}]  }
   0x1   :  { %9 = vsyncpa [#allocation4], 0  ;;  %s262_s12 = smov [#allocation2]  }
   0x2   :  { %s17_s13 = sshll.u32 %s262_s12, 4  ;;  %s18_s13 = int_to_ptr.vmem [resolvable:$true] %s17_s13 }
   0x3   :  { %s226_s14 = scalar_lea.vmem %s18_s13, 1024  ;;  %p231_p1 = scmp.lt.s32.totalorder %s18_s13, %s18_s13 }
   0x4   :  { %p227_p0 = scmp.ne.s32.totalorder %s18_s13, %s226_s14  ;;  %p232_p2 = scmp.lt.s32.totalorder %s226_s14, %s226_s14 }
   0x6   :  { %p233_p3 = por %p232_p2, %p231_p1 }
   0x8   :  { %p234_p4 = pnand %p233_p3, %p227_p0 }
   0xa   :  { %237 = shalt.err (!%p234_p4)
}
   0xb   :  { %s263_s15 = smov 64   ;;  %s264_s16 = smov 4  }
   0xc   :  { %23 = dma.hbm_to_vmem [thread:$0]  %s301_s1, 1024, %s18_s13, [#allocation3], %s263_s15, %s263_s15, %s264_s16  }
   0xd   :  { %258 = dma.done.wait [#allocation3], 1024  }
   0xe   :  { %259 = vsyncadd [#allocation3], 4294966272  ;;  %v265_v0 = vmov 0.0   ;;  %vm266_vm0 = vmmov 0   ;;  %v210_v1 = vld [vmem:[#allocation2 + $0x38] sm:$0xff]   ;;  %v211_v2 = vld [vmem:[#allocation2 + $0x30] sm:$0xff]  }
   0xf   :  { %184 = vmatprep.subr.bf16.mxu0 %v265_v0  ;;  %200 = vmatprep.mubr.msk.bf16.mxu0 %vm266_vm0, %v265_v0  ;;  %v212_v3 = vld [vmem:[#allocation2 + $0x28] sm:$0xff]   ;;  %v213_v4 = vld [vmem:[#allocation2 + $0x20] sm:$0xff]   ;;  %v214_v5 = vld [vmem:[#allocation2 + $0x18] sm:$0xff]   ;;  %s267_s22 = smov [#allocation5]  }
  0x10   :  { %185 = vmatpush3.bf16.msra.mxu0 %v210_v1  ;;  %v215_v6 = vld [vmem:[#allocation2 + $0x10] sm:$0xff]   ;;  %v216_v7 = vld [vmem:[#allocation2 + $0x8] sm:$0xff]   ;;  %v217_v8 = vld [vmem:[#allocation2] sm:$0xff]   ;;  %s157_s23 = sshll.u32 %s267_s22, 4  ;;  %s158_s23 = int_to_ptr.vmem [resolvable:$true] %s157_s23 }
  0x11   :  { %186 = vmatprep.subr.bf16.mxu0 %v265_v0  ;;  %v43_v9 = vld [vmem:[%s300_s0] sm:$0xff]  ;;  %s238_s24 = scalar_lea.vmem %s158_s23, 128  ;;  %p243_p6 = scmp.lt.s32.totalorder %s158_s23, %s158_s23 }
  0x12   :  { %v44_v10 = vpack.c.bf16 %v43_v9, %v43_v9  ;;  %v166_v11 = vld [vmem:[%s302_s2] ss:$0 sm:$0xff]  ;;  %p239_p5 = scmp.ne.s32.totalorder %s158_s23, %s238_s24  ;;  %p244_p7 = scmp.lt.s32.totalorder %s238_s24, %s238_s24 }
  0x14   :  { %187 = vmatpush3.bf16.msra.mxu0 %v211_v2  ;;  %p245_p8 = por %p244_p7, %p243_p6 }
  0x15   :  { %188 = vmatprep.subr.bf16.mxu0 %v265_v0 }
  0x16   :  { %p246_p9 = pnand %p245_p8, %p239_p5 }
  0x18   :  { %189 = vmatpush3.bf16.msra.mxu0 %v212_v3 }
  0x19   :  { %190 = vmatprep.subr.bf16.mxu0 %v265_v0 }
  0x1c   :  { %191 = vmatpush3.bf16.msra.mxu0 %v213_v4 }
  0x1d   :  { %192 = vmatprep.subr.bf16.mxu0 %v265_v0 }
  0x20   :  { %193 = vmatpush3.bf16.msra.mxu0 %v214_v5 }
  0x21   :  { %194 = vmatprep.subr.bf16.mxu0 %v265_v0 }
  0x24   :  { %195 = vmatpush3.bf16.msra.mxu0 %v215_v6 }
  0x25   :  { %196 = vmatprep.subr.bf16.mxu0 %v265_v0 }
  0x28   :  { %197 = vmatpush3.bf16.msra.mxu0 %v216_v7 }
  0x29   :  { %198 = vmatprep.subr.bf16.mxu0 %v265_v0 }
  0x2c   :  { %199 = vmatpush3.bf16.msra.mxu0 %v217_v8 }
  0x2f   :  { %201 = vmatmul.mubr.bf16.vlgmr.msra.gmra.mxu0 %v44_v10 }
  0xef   :  { %v143_v12 = vpop.f32.mrf.mxu0 }
  0xf0   :  { %v149_v13 = vadd.f32 %v166_v11, %v143_v12 }
  0xf1   :  { %v202_v14 = vpop.f32.mrf.mxu0 }
  0xf2   :  { %150 = vst [vmem:[#allocation5] sm:$0xff] %v149_v13 }
  0xf3   :  { %v146_v15 = vpop.f32.mrf.mxu0 }
  0xf4   :  { %249 = shalt.err (!%p246_p9)
}
  0xf5   :  { %160 = dma.vmem_to_hbm [thread:$0]  %s158_s23, 128, %s303_s3, [#allocation4]   ;;  %v203_v16 = vpop.f32.mrf.mxu0 }
  0xf6   :  { %260 = dma.done.wait [#allocation4], 128  }
  0xf7   :  { %261 = vsyncadd [#allocation4], 4294967168 }
  0xf8   :  { %164 = vsyncpa [#allocation3], 1 }
  0xf9   :  { %165 = vsyncpa [#allocation4], 1 }

</bundles_post_ra>
